<compile_context>
chip_gen: v6e
topology: v6e:2x2x1
jax: 0.10.0
libtpu: 0.0.40
codegen_flags: <defaults>
</compile_context>

<pallas_src>
import jax
import jax.numpy as jnp
from jax.experimental import pallas as pl
from jax.experimental.pallas import tpu as pltpu


def modrelu_kernel(x_ref, b_ref, o_ref):
    # x_ref: (tr, tc) tile; b_ref: (tr, 1) per-tile bias column.
    x = x_ref[...]
    b = b_ref[...]                        # (tr, 1) broadcasts over lanes
    mag = jnp.abs(x)
    d = mag + 1e-8
    # EUP approx reciprocal (otherwise-idle slot) + one Newton refinement:
    # rel. error ~(2^-12)^2, comfortably inside the 1e-5 tolerance.
    r = pl.reciprocal(d, approx=True)
    r = r * (2.0 - d * r)
    o_ref[...] = jnp.maximum(mag + b, 0.0) * (x * r)


def _vmem_capacity_bytes():
    try:
        return int(pltpu.get_tpu_info().vmem_capacity_bytes)
    except Exception:
        return 64 << 20  # conservative fallback (v7x per-TC VMEM)


def _pick_tiles(rows, cols, itemsize, target_bytes):
    """Pick (tr, tc): tr a multiple of 8 (or == rows), tc a multiple of 128
    (or == cols), with tr * tc * itemsize <= ~target_bytes."""
    lane, sub = 128, 8
    # Largest lane-multiple column tile that fits the budget at 8 rows.
    budget_cols = max(lane, (target_bytes // (sub * itemsize)) // lane * lane)
    if cols <= budget_cols:
        tc = cols                      # spans full dim -> single column tile
    else:
        tc = budget_cols               # multiple of 128; ragged tail masked
    tr = max(sub, (target_bytes // max(1, tc * itemsize)) // sub * sub)
    tr = min(tr, rows)
    return tr, tc


def modrelu(x, bias, *, target_tile_bytes=None):
    """ModReLU forward.  x: (N, C, H, W) float32, bias: (C,) float32."""
    N, C, H, W = x.shape
    rows, cols = N * C, H * W
    itemsize = x.dtype.itemsize

    cap = _vmem_capacity_bytes()
    if target_tile_bytes is None:
        # Bigger tiles amortize per-step overhead on 128 MiB parts (v5e/v6e);
        # stay at 4 MiB on 64 MiB-VMEM parts (v7x).
        target_tile_bytes = (8 << 20) if cap >= (96 << 20) else (4 << 20)

    x2 = x.reshape(rows, cols)
    # Per-row bias column (row r -> bias[r % C]); blocked per tile, so no
    # padding or residency in VMEM is needed.
    b2 = jnp.tile(bias.astype(x.dtype), N).reshape(rows, 1)

    tr, tc = _pick_tiles(rows, cols, itemsize, target_tile_bytes)
    grid = (pl.cdiv(rows, tr), pl.cdiv(cols, tc))

    # 2x double-buffered x tile + 2x output tile + 2x lane-padded bias tile
    # ((tr,1) pads 1 -> 128 lanes in VMEM) + slack; keep ~25% VMEM headroom.
    tile_bytes = tr * tc * itemsize
    bias_tile_bytes = tr * 128 * itemsize
    vmem_need = 4 * tile_bytes + 2 * bias_tile_bytes + (2 << 20)
    vmem_limit = int(min(max(vmem_need, 32 << 20), (cap * 3) // 4))

    out2 = pl.pallas_call(
        modrelu_kernel,
        out_shape=jax.ShapeDtypeStruct((rows, cols), x.dtype),
        grid_spec=pltpu.PrefetchScalarGridSpec(
            num_scalar_prefetch=0,
            grid=grid,
            in_specs=[
                pl.BlockSpec((tr, tc), lambda i, j: (i, j)),
                pl.BlockSpec((tr, 1), lambda i, j: (i, 0)),
            ],
            out_specs=pl.BlockSpec((tr, tc), lambda i, j: (i, j)),
        ),
        compiler_params=pltpu.CompilerParams(
            dimension_semantics=("parallel", "parallel"),
            vmem_limit_bytes=vmem_limit,
        ),
    )(x2, b2)

    return out2.reshape(N, C, H, W)


def modrelu_ref(x, bias):
    mag = jnp.abs(x)
    phase = x / (mag + 1e-8)
    b = bias.reshape(1, -1, 1, 1)
    return jnp.maximum(mag + b, 0.0) * phase


if __name__ == "__main__":
    key = jax.random.PRNGKey(0)
    kx, kb = jax.random.split(key)

    N, C, H, W = 2, 4, 16, 16
    x = jax.random.normal(kx, (N, C, H, W), dtype=jnp.float32)
    # nn.Parameter(torch.zeros(num_features)) -> shape (C,); use a small
    # deterministic non-zero bias so the ReLU threshold is exercised.
    bias = 0.5 * jax.random.normal(kb, (C,), dtype=jnp.float32)

    out = jax.block_until_ready(modrelu(x, bias))
    ref = modrelu_ref(x, bias)

    assert out.shape == (N, C, H, W)
    assert jnp.allclose(out, ref, atol=1e-5, rtol=1e-5)

    print("KERNEL_OK")
</pallas_src>

<mosaic_0001>
module attributes {stable_mosaic.version = 11 : i64} {
  func.func @modrelu_kernel(%arg0: i32, %arg1: i32, %arg2: memref<8x256xf32, #tpu.memory_space<vmem>>, %arg3: memref<8x1xf32, #tpu.memory_space<vmem>>, %arg4: memref<8x256xf32, #tpu.memory_space<vmem>>) attributes {dimension_semantics = [#tpu.dimension_semantics<parallel>, #tpu.dimension_semantics<parallel>], iteration_bounds = array<i64: 1, 1>, scalar_prefetch = 0 : i64, scratch_operands = 0 : i64, tpu.core_type = #tpu.core_type<tc>, window_params = [{transform_indices = @transform_0, window_bounds = array<i64: 8, 256>}, {transform_indices = @transform_1, window_bounds = array<i64: 8, 1>}, {transform_indices = @transform_2, window_bounds = array<i64: 8, 256>}]} {
    %c0 = arith.constant 0 : index
    %c0_0 = arith.constant 0 : index
    %0 = vector.load %arg2[%c0, %c0_0] : memref<8x256xf32, #tpu.memory_space<vmem>>, vector<8x256xf32>
    %c0_1 = arith.constant 0 : index
    %c0_2 = arith.constant 0 : index
    %1 = vector.load %arg3[%c0_1, %c0_2] : memref<8x1xf32, #tpu.memory_space<vmem>>, vector<8x1xf32>
    %2 = math.absf %0 : vector<8x256xf32>
    %cst = arith.constant 9.99999993E-9 : f32
    %3 = vector.broadcast %cst : f32 to vector<8x256xf32>
    %4 = arith.addf %2, %3 : vector<8x256xf32>
    %5 = tpu.reciprocal %4 {approx = true} : vector<8x256xf32> -> vector<8x256xf32>
    %6 = arith.mulf %4, %5 : vector<8x256xf32>
    %cst_3 = arith.constant 2.000000e+00 : f32
    %7 = vector.broadcast %cst_3 : f32 to vector<8x256xf32>
    %8 = arith.subf %7, %6 : vector<8x256xf32>
    %9 = arith.mulf %5, %8 : vector<8x256xf32>
    %10 = vector.broadcast %1 : vector<8x1xf32> to vector<8x256xf32>
    %11 = arith.addf %2, %10 : vector<8x256xf32>
    %cst_4 = arith.constant 0.000000e+00 : f32
    %12 = vector.broadcast %cst_4 : f32 to vector<8x256xf32>
    %13 = arith.maximumf %11, %12 : vector<8x256xf32>
    %14 = arith.mulf %0, %9 : vector<8x256xf32>
    %15 = arith.mulf %13, %14 : vector<8x256xf32>
    %c0_5 = arith.constant 0 : index
    %c0_6 = arith.constant 0 : index
    %16 = vector.load %arg4[%c0_5, %c0_6] : memref<8x256xf32, #tpu.memory_space<vmem>>, vector<8x256xf32>
    tpu.vector_store %arg4[%c0_5, %c0_6], %15 {strides = array<i32>} : memref<8x256xf32, #tpu.memory_space<vmem>>, vector<8x256xf32>,
    return
  }
  func.func @transform_0(%arg0: i32, %arg1: i32) -> (i32, i32) {
    %c0_i32 = arith.constant 0 : i32
    return %arg0, %arg1 : i32, i32
  }
  func.func @transform_1(%arg0: i32, %arg1: i32) -> (i32, i32) {
    %c0_i32 = arith.constant 0 : i32
    %c0_i32_0 = arith.constant 0 : i32
    return %arg0, %c0_i32 : i32, i32
  }
  func.func @transform_2(%arg0: i32, %arg1: i32) -> (i32, i32) {
    %c0_i32 = arith.constant 0 : i32
    return %arg0, %arg1 : i32, i32
  }
}

</mosaic_0001>

<bundles_post_ra>
// kernel: tpu_custom_call.1
= control target key start
LH: loop header
LB: loop body
LE: loop exit
PB: predicated region body
PF: predicated region fallthrough
CT: control target
= control target key end

     0   :  { %7 = vsyncpa [#allocation3], 0  ;;  %s148_s0 = inlined_call_operand.hbm [shape: f32[8,256], index: 0, kind: input, shape index: {}]   ;;  %s149_s1 = inlined_call_operand.vmem [shape: f32[8,1], index: 1, kind: input, shape index: {}]   ;;  %s150_s2 = inlined_call_operand.hbm [shape: f32[8,256], index: 2, kind: output, shape index: {}]  }
   0x1   :  { %8 = vsyncpa [#allocation4], 0  ;;  %s121_s9 = smov [#allocation2]  }
   0x2   :  { %s15_s10 = sshll.u32 %s121_s9, 4  ;;  %s16_s10 = int_to_ptr.vmem [resolvable:$true] %s15_s10 }
   0x3   :  { %s85_s11 = scalar_lea.vmem %s16_s10, 256  ;;  %p90_p1 = scmp.lt.s32.totalorder %s16_s10, %s16_s10 }
   0x4   :  { %p86_p0 = scmp.ne.s32.totalorder %s16_s10, %s85_s11  ;;  %p91_p2 = scmp.lt.s32.totalorder %s85_s11, %s85_s11 }
   0x6   :  { %p92_p3 = por %p91_p2, %p90_p1 }
   0x8   :  { %p93_p4 = pnand %p92_p3, %p86_p0 }
   0xa   :  { %96 = shalt.err (!%p93_p4)
}
   0xb   :  { %18 = dma.hbm_to_vmem [thread:$0]  %s148_s0, 256, %s16_s10, [#allocation3]  }
   0xc   :  { %117 = dma.done.wait [#allocation3], 256  }
   0xd   :  { %118 = vsyncadd [#allocation3], 4294967040  ;;  %v122_v0 = vmov 0   ;;  %v26_v1 = vld [vmem:[%s149_s1] sm:$0xff]  ;;  %v25_v3 = vld [vmem:[#allocation2 + $0x8] sm:$0xff]  ;;  %s123_s0 = smov [#allocation5]  }
   0xe   :  { %72 = vset.pattern.permute.xlu0 %v122_v0  ;;  %v24_v2 = vld [vmem:[#allocation2] sm:$0xff]  ;;  %v28_v5 = vand.u32 2147483647, %v25_v3  ;;  %s60_s1 = sshll.u32 %s123_s0, 4  ;;  %s61_s1 = int_to_ptr.vmem [resolvable:$true] %s60_s1 }
   0xf   :  { %41 = vperm.xlu0 %72, %v26_v1   ;;  %v27_v4 = vand.u32 2147483647, %v24_v2  ;;  %s97_s16 = scalar_lea.vmem %s61_s1, 256  ;;  %p102_p6 = scmp.lt.s32.totalorder %s61_s1, %s61_s1 }
  0x10   :  { %v30_v7 = vadd.f32 1e-08, %v28_v5  ;;  %p98_p5 = scmp.ne.s32.totalorder %s61_s1, %s97_s16  ;;  %p103_p7 = scmp.lt.s32.totalorder %s97_s16, %s97_s16 }
  0x11   :  { %v29_v6 = vadd.f32 1e-08, %v27_v4 }
  0x12   :  { %p104_p8 = por %p103_p7, %p102_p6 }
  0x13   :  { %73 = vrcp.f32 %v29_v6 }
  0x14   :  { %75 = vrcp.f32 %v30_v7  ;;  %p105_p9 = pnand %p104_p8, %p98_p5 }
  0x20   :  { %v74_v8 = vpop.eup %73 }
  0x21   :  { %v76_v9 = vpop.eup %75  ;;  %v33_v10 = vmul.f32 %v74_v8, %v29_v6 }
  0x22   :  { %v34_v11 = vmul.f32 %v76_v9, %v30_v7 }
  0x23   :  { %v35_v12 = vsub.f32 2.0, %v33_v10 }
  0x24   :  { %v36_v13 = vsub.f32 2.0, %v34_v11 }
  0x25   :  { %v37_v14 = vmul.f32 %v74_v8, %v35_v12 }
  0x26   :  { %v38_v15 = vmul.f32 %v76_v9, %v36_v13 }
  0x27   :  { %v48_v19 = vmul.f32 %v37_v14, %v24_v2 }
  0x28   :  { %v49_v20 = vmul.f32 %v38_v15, %v25_v3 }
  0x8a   :  { %v42_v16 = vpop.permute.xlu0 %41 }
  0x8b   :  { %v44_v17 = vadd.f32 %v42_v16, %v27_v4  ;;  %v45_v18 = vadd.f32 %v42_v16, %v28_v5 }
  0x8d   :  { %v46_v21 = vmax.f32 %v44_v17, 0.0  ;;  %v47_v22 = vmax.f32 %v45_v18, 0.0 }
  0x8f   :  { %v50_v23 = vmul.f32 %v48_v19, %v46_v21  ;;  %v51_v24 = vmul.f32 %v49_v20, %v47_v22 }
  0x91   :  { %52 = vst [vmem:[#allocation5] sm:$0xff] %v50_v23  ;;  %53 = vst [vmem:[#allocation5 + $0x8] sm:$0xff] %v51_v24 }
  0x92   :  { %108 = shalt.err (!%p105_p9)
}
  0x93   :  { %63 = dma.vmem_to_hbm [thread:$0]  %s61_s1, 256, %s150_s2, [#allocation4]  }
  0x94   :  { %119 = dma.done.wait [#allocation4], 256  }
  0x95   :  { %120 = vsyncadd [#allocation4], 4294967040 }
  0x96   :  { %67 = vsyncpa [#allocation3], 1 }
  0x97   :  { %68 = vsyncpa [#allocation4], 1 }

</bundles_post_ra>
